<compile_context>
chip_gen: v7x
topology: tpu7x:2x2x1
jax: 0.10.0
libtpu: 0.0.40
codegen_flags: <defaults>
</compile_context>

<pallas_src>
import jax
import jax.numpy as jnp
from jax.experimental import pallas as pl
from jax.experimental.pallas import tpu as pltpu

HIDDEN = (256, 128, 64)
LANE = 128


def _round_up(n, m):
    return ((n + m - 1) // m) * m


def mlp_q_kernel(x_ref,
                 w1_ref, b1_ref,
                 w2_ref, b2_ref,
                 w3_ref, b3_ref,
                 w4_ref, b4_ref,
                 o_ref):
    """All four Linear layers + ReLUs fused in one kernel body (MXU + VPU).

    MXU operands are cast to the weight dtype (f32 or bf16); accumulation and
    all elementwise math (bias add, ReLU) stay in f32.
    """
    wdt = w1_ref.dtype

    x = x_ref[...].astype(wdt)
    h1 = jnp.dot(x, w1_ref[...], preferred_element_type=jnp.float32) + b1_ref[...]
    h1 = jnp.maximum(h1, 0.0)

    h2 = jnp.dot(h1.astype(wdt), w2_ref[...],
                 preferred_element_type=jnp.float32) + b2_ref[...]
    h2 = jnp.maximum(h2, 0.0)

    h3 = jnp.dot(h2.astype(wdt), w3_ref[...],
                 preferred_element_type=jnp.float32) + b3_ref[...]
    h3 = jnp.maximum(h3, 0.0)

    out = jnp.dot(h3.astype(wdt), w4_ref[...],
                  preferred_element_type=jnp.float32) + b4_ref[...]
    o_ref[...] = out.astype(o_ref.dtype)


def init_params(key, state_dim, num_actions, dtype=jnp.float32):
    """PyTorch-style init: U(-1/sqrt(fan_in), 1/sqrt(fan_in)).

    Weights are stored as (in_features, out_features) — the transpose of
    torch.nn.Linear.weight — so the kernel can do x @ W directly.
    Use dtype=jnp.bfloat16 on v6e/v7x for 2x MXU rate (f32 accumulation is
    kept inside the kernel).
    """
    dims = (state_dim,) + HIDDEN + (num_actions,)
    params = []
    for i in range(4):
        fan_in, fan_out = dims[i], dims[i + 1]
        key, kw, kb = jax.random.split(key, 3)
        bound = 1.0 / (fan_in ** 0.5)
        w = jax.random.uniform(kw, (fan_in, fan_out), jnp.float32, -bound, bound)
        b = jax.random.uniform(kb, (1, fan_out), jnp.float32, -bound, bound)
        params += [w.astype(dtype), b.astype(dtype)]
    return params


def mlp_q_forward(x, params, *, batch_tile=None):
    """Fused MLP Q-network forward pass via pallas_call."""
    B, state_dim = x.shape
    w1, b1, w2, b2, w3, b3, w4, b4 = params
    num_actions = w4.shape[-1]

    # ---- lane-dense final layer: pad outputs to a multiple of 128 lanes ----
    out_cols = _round_up(max(num_actions, LANE), LANE)
    if out_cols != num_actions:
        w4 = jnp.pad(w4, ((0, 0), (0, out_cols - num_actions)))
        b4 = jnp.pad(b4, ((0, 0), (0, out_cols - num_actions)))
    padded_params = (w1, b1, w2, b2, w3, b3, w4, b4)

    # ---- batch tiling: sublane-aligned tile, batch padded to a multiple ----
    sub = 8 * (4 // jnp.dtype(x.dtype).itemsize)     # 8 rows f32, 16 rows bf16
    if batch_tile is None:
        batch_tile = min(512, _round_up(B, sub))     # 512 rows is safe on v7x's 64 MiB VMEM
    batch_tile = _round_up(int(batch_tile), sub)
    assert batch_tile % sub == 0

    Bp = _round_up(B, batch_tile)
    if Bp != B:
        x = jnp.pad(x, ((0, Bp - B), (0, 0)))

    grid = (Bp // batch_tile,)

    # x / output tiled over the batch; weights & biases have a constant index
    # map so they stay resident (no per-step re-DMA) — they are <0.3 MiB total.
    in_specs = [pl.BlockSpec((batch_tile, state_dim), lambda i: (i, 0))]
    for p in padded_params:
        in_specs.append(pl.BlockSpec(p.shape, lambda i: (0, 0)))
    out_spec = pl.BlockSpec((batch_tile, out_cols), lambda i: (i, 0))

    # Advisory cost estimate for XLA's scheduler.
    ws = (w1, w2, w3, w4)
    flops = 2 * Bp * sum(int(w.shape[0]) * int(w.shape[1]) for w in ws)
    bytes_accessed = (x.size * x.dtype.itemsize
                      + Bp * out_cols * x.dtype.itemsize
                      + sum(p.size * p.dtype.itemsize for p in padded_params))

    out = pl.pallas_call(
        mlp_q_kernel,
        out_shape=jax.ShapeDtypeStruct((Bp, out_cols), x.dtype),
        grid_spec=pltpu.PrefetchScalarGridSpec(
            num_scalar_prefetch=0,
            grid=grid,
            in_specs=in_specs,
            out_specs=out_spec,
        ),
        compiler_params=pltpu.CompilerParams(
            dimension_semantics=("parallel",)),
        cost_estimate=pl.CostEstimate(
            flops=flops, transcendentals=0, bytes_accessed=bytes_accessed),
    )(x, *padded_params)

    return out[:B, :num_actions]


def mlp_q_reference(x, params):
    """Pure-JAX reference with identical precision semantics."""
    w1, b1, w2, b2, w3, b3, w4, b4 = params
    wdt = w1.dtype
    h = x
    for w, b in ((w1, b1), (w2, b2), (w3, b3)):
        h = jnp.maximum(
            jnp.dot(h.astype(wdt), w, preferred_element_type=jnp.float32) + b, 0.0)
    out = jnp.dot(h.astype(wdt), w4, preferred_element_type=jnp.float32) + b4
    return out.astype(x.dtype)


if __name__ == "__main__":
    key = jax.random.PRNGKey(0)
    key, kx, kx2, kp = jax.random.split(key, 4)

    batch = 8
    state_dim = 16
    num_actions = 4

    # --- small f32 check (matches PyTorch semantics exactly) ---
    x = jax.random.normal(kx, (batch, state_dim), jnp.float32)
    params = init_params(kp, state_dim, num_actions, dtype=jnp.float32)

    out = jax.block_until_ready(mlp_q_forward(x, params))
    ref = mlp_q_reference(x, params)
    assert out.shape == (batch, num_actions)
    assert jnp.allclose(out, ref, atol=1e-4, rtol=1e-4)

    # --- larger batch: exercises the multi-step pipelined grid path ---
    x_big = jax.random.normal(kx2, (1024, state_dim), jnp.float32)
    out_big = jax.block_until_ready(mlp_q_forward(x_big, params, batch_tile=256))
    ref_big = mlp_q_reference(x_big, params)
    assert out_big.shape == (1024, num_actions)
    assert jnp.allclose(out_big, ref_big, atol=1e-4, rtol=1e-4)

    # --- bf16 weight path (recommended on v6e/v7x), f32 accumulation ---
    params_bf16 = init_params(kp, state_dim, num_actions, dtype=jnp.bfloat16)
    out_bf16 = jax.block_until_ready(mlp_q_forward(x_big, params_bf16))
    ref_bf16 = mlp_q_reference(x_big, params_bf16)
    assert jnp.allclose(out_bf16, ref_bf16, atol=1e-2, rtol=1e-2)

    print("KERNEL_OK")
</pallas_src>

<mosaic_0001>
module attributes {stable_mosaic.version = 11 : i64} {
  func.func @mlp_q_kernel(%arg0: i32, %arg1: memref<8x16xf32, #tpu.memory_space<vmem>>, %arg2: memref<16x256xf32, #tpu.memory_space<vmem>>, %arg3: memref<1x256xf32, #tpu.memory_space<vmem>>, %arg4: memref<256x128xf32, #tpu.memory_space<vmem>>, %arg5: memref<1x128xf32, #tpu.memory_space<vmem>>, %arg6: memref<128x64xf32, #tpu.memory_space<vmem>>, %arg7: memref<1x64xf32, #tpu.memory_space<vmem>>, %arg8: memref<64x128xf32, #tpu.memory_space<vmem>>, %arg9: memref<1x128xf32, #tpu.memory_space<vmem>>, %arg10: memref<8x128xf32, #tpu.memory_space<vmem>>) attributes {dimension_semantics = [#tpu.dimension_semantics<parallel>], iteration_bounds = array<i64: 1>, scalar_prefetch = 0 : i64, scratch_operands = 0 : i64, tpu.core_type = #tpu.core_type<tc>, window_params = [{transform_indices = @transform_0, window_bounds = array<i64: 8, 16>}, {pipeline_mode = #tpu.pipeline_mode<synchronous>, transform_indices = @transform_1, window_bounds = array<i64: 16, 256>}, {pipeline_mode = #tpu.pipeline_mode<synchronous>, transform_indices = @transform_2, window_bounds = array<i64: 1, 256>}, {pipeline_mode = #tpu.pipeline_mode<synchronous>, transform_indices = @transform_3, window_bounds = array<i64: 256, 128>}, {pipeline_mode = #tpu.pipeline_mode<synchronous>, transform_indices = @transform_4, window_bounds = array<i64: 1, 128>}, {pipeline_mode = #tpu.pipeline_mode<synchronous>, transform_indices = @transform_5, window_bounds = array<i64: 128, 64>}, {pipeline_mode = #tpu.pipeline_mode<synchronous>, transform_indices = @transform_6, window_bounds = array<i64: 1, 64>}, {pipeline_mode = #tpu.pipeline_mode<synchronous>, transform_indices = @transform_7, window_bounds = array<i64: 64, 128>}, {pipeline_mode = #tpu.pipeline_mode<synchronous>, transform_indices = @transform_8, window_bounds = array<i64: 1, 128>}, {transform_indices = @transform_9, window_bounds = array<i64: 8, 128>}]} {
    %c0 = arith.constant 0 : index
    %c0_0 = arith.constant 0 : index
    %0 = vector.load %arg1[%c0, %c0_0] : memref<8x16xf32, #tpu.memory_space<vmem>>, vector<8x16xf32>
    %c0_1 = arith.constant 0 : index
    %c0_2 = arith.constant 0 : index
    %1 = vector.load %arg2[%c0_1, %c0_2] : memref<16x256xf32, #tpu.memory_space<vmem>>, vector<16x256xf32>
    %cst = arith.constant dense<0.000000e+00> : vector<8x256xf32>
    %2 = tpu.matmul %0, %1, %cst {dimension_numbers = #tpu.dot_dimension_numbers<[1], [0], [0], [1], [0, 0, 1, 1], [], []>} : vector<8x16xf32>, vector<16x256xf32>, vector<8x256xf32> -> vector<8x256xf32>
    %c0_3 = arith.constant 0 : index
    %c0_4 = arith.constant 0 : index
    %3 = vector.load %arg3[%c0_3, %c0_4] : memref<1x256xf32, #tpu.memory_space<vmem>>, vector<1x256xf32>
    %4 = vector.broadcast %3 : vector<1x256xf32> to vector<8x256xf32>
    %5 = arith.addf %2, %4 : vector<8x256xf32>
    %cst_5 = arith.constant 0.000000e+00 : f32
    %6 = vector.broadcast %cst_5 : f32 to vector<8x256xf32>
    %7 = arith.maximumf %5, %6 : vector<8x256xf32>
    %c0_6 = arith.constant 0 : index
    %c0_7 = arith.constant 0 : index
    %8 = vector.load %arg4[%c0_6, %c0_7] : memref<256x128xf32, #tpu.memory_space<vmem>>, vector<256x128xf32>
    %cst_8 = arith.constant dense<0.000000e+00> : vector<8x128xf32>
    %9 = tpu.matmul %7, %8, %cst_8 {dimension_numbers = #tpu.dot_dimension_numbers<[1], [0], [0], [1], [0, 0, 1, 1], [], []>} : vector<8x256xf32>, vector<256x128xf32>, vector<8x128xf32> -> vector<8x128xf32>
    %c0_9 = arith.constant 0 : index
    %c0_10 = arith.constant 0 : index
    %10 = vector.load %arg5[%c0_9, %c0_10] : memref<1x128xf32, #tpu.memory_space<vmem>>, vector<1x128xf32>
    %11 = vector.broadcast %10 : vector<1x128xf32> to vector<8x128xf32>
    %12 = arith.addf %9, %11 : vector<8x128xf32>
    %cst_11 = arith.constant 0.000000e+00 : f32
    %13 = vector.broadcast %cst_11 : f32 to vector<8x128xf32>
    %14 = arith.maximumf %12, %13 : vector<8x128xf32>
    %c0_12 = arith.constant 0 : index
    %c0_13 = arith.constant 0 : index
    %15 = vector.load %arg6[%c0_12, %c0_13] : memref<128x64xf32, #tpu.memory_space<vmem>>, vector<128x64xf32>
    %cst_14 = arith.constant dense<0.000000e+00> : vector<8x64xf32>
    %16 = tpu.matmul %14, %15, %cst_14 {dimension_numbers = #tpu.dot_dimension_numbers<[1], [0], [0], [1], [0, 0, 1, 1], [], []>} : vector<8x128xf32>, vector<128x64xf32>, vector<8x64xf32> -> vector<8x64xf32>
    %c0_15 = arith.constant 0 : index
    %c0_16 = arith.constant 0 : index
    %17 = vector.load %arg7[%c0_15, %c0_16] : memref<1x64xf32, #tpu.memory_space<vmem>>, vector<1x64xf32>
    %18 = vector.broadcast %17 : vector<1x64xf32> to vector<8x64xf32>
    %19 = arith.addf %16, %18 : vector<8x64xf32>
    %cst_17 = arith.constant 0.000000e+00 : f32
    %20 = vector.broadcast %cst_17 : f32 to vector<8x64xf32>
    %21 = arith.maximumf %19, %20 : vector<8x64xf32>
    %c0_18 = arith.constant 0 : index
    %c0_19 = arith.constant 0 : index
    %22 = vector.load %arg8[%c0_18, %c0_19] : memref<64x128xf32, #tpu.memory_space<vmem>>, vector<64x128xf32>
    %cst_20 = arith.constant dense<0.000000e+00> : vector<8x128xf32>
    %23 = tpu.matmul %21, %22, %cst_20 {dimension_numbers = #tpu.dot_dimension_numbers<[1], [0], [0], [1], [0, 0, 1, 1], [], []>} : vector<8x64xf32>, vector<64x128xf32>, vector<8x128xf32> -> vector<8x128xf32>
    %c0_21 = arith.constant 0 : index
    %c0_22 = arith.constant 0 : index
    %24 = vector.load %arg9[%c0_21, %c0_22] : memref<1x128xf32, #tpu.memory_space<vmem>>, vector<1x128xf32>
    %25 = vector.broadcast %24 : vector<1x128xf32> to vector<8x128xf32>
    %26 = arith.addf %23, %25 : vector<8x128xf32>
    %c0_23 = arith.constant 0 : index
    %c0_24 = arith.constant 0 : index
    %27 = vector.load %arg10[%c0_23, %c0_24] : memref<8x128xf32, #tpu.memory_space<vmem>>, vector<8x128xf32>
    tpu.vector_store %arg10[%c0_23, %c0_24], %26 {strides = array<i32>} : memref<8x128xf32, #tpu.memory_space<vmem>>, vector<8x128xf32>,
    return
  }
  func.func @transform_0(%arg0: i32) -> (i32, i32) {
    %c0_i32 = arith.constant 0 : i32
    %c0_i32_0 = arith.constant 0 : i32
    return %arg0, %c0_i32 : i32, i32
  }
  func.func @transform_1(%arg0: i32) -> (i32, i32) {
    %c0_i32 = arith.constant 0 : i32
    %c0_i32_0 = arith.constant 0 : i32
    %c0_i32_1 = arith.constant 0 : i32
    return %c0_i32, %c0_i32_0 : i32, i32
  }
  func.func @transform_2(%arg0: i32) -> (i32, i32) {
    %c0_i32 = arith.constant 0 : i32
    %c0_i32_0 = arith.constant 0 : i32
    %c0_i32_1 = arith.constant 0 : i32
    return %c0_i32, %c0_i32_0 : i32, i32
  }
  func.func @transform_3(%arg0: i32) -> (i32, i32) {
    %c0_i32 = arith.constant 0 : i32
    %c0_i32_0 = arith.constant 0 : i32
    %c0_i32_1 = arith.constant 0 : i32
    return %c0_i32, %c0_i32_0 : i32, i32
  }
  func.func @transform_4(%arg0: i32) -> (i32, i32) {
    %c0_i32 = arith.constant 0 : i32
    %c0_i32_0 = arith.constant 0 : i32
    %c0_i32_1 = arith.constant 0 : i32
    return %c0_i32, %c0_i32_0 : i32, i32
  }
  func.func @transform_5(%arg0: i32) -> (i32, i32) {
    %c0_i32 = arith.constant 0 : i32
    %c0_i32_0 = arith.constant 0 : i32
    %c0_i32_1 = arith.constant 0 : i32
    return %c0_i32, %c0_i32_0 : i32, i32
  }
  func.func @transform_6(%arg0: i32) -> (i32, i32) {
    %c0_i32 = arith.constant 0 : i32
    %c0_i32_0 = arith.constant 0 : i32
    %c0_i32_1 = arith.constant 0 : i32
    return %c0_i32, %c0_i32_0 : i32, i32
  }
  func.func @transform_7(%arg0: i32) -> (i32, i32) {
    %c0_i32 = arith.constant 0 : i32
    %c0_i32_0 = arith.constant 0 : i32
    %c0_i32_1 = arith.constant 0 : i32
    return %c0_i32, %c0_i32_0 : i32, i32
  }
  func.func @transform_8(%arg0: i32) -> (i32, i32) {
    %c0_i32 = arith.constant 0 : i32
    %c0_i32_0 = arith.constant 0 : i32
    %c0_i32_1 = arith.constant 0 : i32
    return %c0_i32, %c0_i32_0 : i32, i32
  }
  func.func @transform_9(%arg0: i32) -> (i32, i32) {
    %c0_i32 = arith.constant 0 : i32
    %c0_i32_0 = arith.constant 0 : i32
    return %arg0, %c0_i32 : i32, i32
  }
}

</mosaic_0001>

<bundles_post_ra>
// kernel: tpu_custom_call.1
= control target key start
LH: loop header
LB: loop body
LE: loop exit
PB: predicated region body
PF: predicated region fallthrough
CT: control target
= control target key end

     0   :  { %14 = vsyncpa [#allocation3], 0  ;;  %s892_s0 = inlined_call_operand.vmem [shape: f32[8,16], index: 0, kind: input, shape index: {}]   ;;  %s893_s1 = inlined_call_operand.vmem [shape: f32[16,256], index: 1, kind: input, shape index: {}]   ;;  %s894_s2 = inlined_call_operand.vmem [shape: f32[1,256], index: 2, kind: input, shape index: {}]   ;;  %s895_s3 = inlined_call_operand.hbm [shape: f32[256,128], index: 3, kind: input, shape index: {}]   ;;  %s896_s4 = inlined_call_operand.vmem [shape: f32[1,128], index: 4, kind: input, shape index: {}]   ;;  %s897_s5 = inlined_call_operand.vmem [shape: f32[128,64], index: 5, kind: input, shape index: {}]   ;;  %s898_s6 = inlined_call_operand.vmem [shape: f32[1,64], index: 6, kind: input, shape index: {}]   ;;  %s899_s7 = inlined_call_operand.vmem [shape: f32[64,128], index: 7, kind: input, shape index: {}]   ;;  %s900_s8 = inlined_call_operand.vmem [shape: f32[1,128], index: 8, kind: input, shape index: {}]   ;;  %s901_s9 = inlined_call_operand.hbm [shape: f32[8,128], index: 9, kind: output, shape index: {}]  }
   0x1   :  { %15 = vsyncpa [#allocation4], 0  ;;  %s697_s30 = smov [#allocation2]   ;;  %s649_s13 = scalar_lea.hbm %s895_s3, 4096 }
   0x2   :  { %s27_s10 = sshll.u32 %s697_s30, 4  ;;  %p650_p0 = scmp.ne.s32.totalorder %s895_s3, %s649_s13  ;;  %s28_s10 = int_to_ptr.vmem [resolvable:$true] %s27_s10 }
   0x3   :  { %p653_p1 = scmp.lt.u32.totalorder %s649_s13, %s895_s3 }
   0x5   :  { %p655_p2 = pnand %p653_p1, %p650_p0 }
   0x7   :  { %658 = shalt.err (!%p655_p2)
}
   0x8   :  { %s659_s18 = scalar_lea.vmem %s28_s10, 4096  ;;  %p664_p4 = scmp.lt.s32.totalorder %s28_s10, %s28_s10 }
   0x9   :  { %p660_p3 = scmp.ne.s32.totalorder %s28_s10, %s659_s18  ;;  %p665_p5 = scmp.lt.s32.totalorder %s659_s18, %s659_s18 }
   0xb   :  { %p666_p6 = por %p665_p5, %p664_p4 }
   0xd   :  { %p667_p7 = pnand %p666_p6, %p660_p3 }
   0xf   :  { %670 = shalt.err (!%p667_p7)
}
  0x10   :  { %s698_s19 = smov 128   ;;  %s699_s20 = smov 8  }
  0x11   :  { %33 = dma.hbm_to_vmem [thread:$0]  %s895_s3, 4096, %s28_s10, [#allocation3], %s698_s19, %s698_s19, %s699_s20  }
  0x12   :  { %693 = dma.done.wait [#allocation3], 4096  }
  0x13   :  { %694 = vsyncadd [#allocation3], 4294963200  ;;  %v700_v0 = vmov 0.0   ;;  %v49_v1 = vld [vmem:[%s893_s1 + $0x8] sm:$0xff]  ;;  %v51_v2 = vld [vmem:[%s893_s1 + $0x18] sm:$0xff]  ;;  %vm64_vm0 = vcmask 130048  }
  0x14   :  { %132 = vmatprep.mubr.f32.mxu0 %v700_v0  ;;  %v48_v3 = vld [vmem:[%s893_s1] sm:$0xff]  ;;  %v570_v4 = vpack.c.bf16 %v51_v2, %v49_v1  ;;  %v50_v5 = vld [vmem:[%s893_s1 + $0x10] sm:$0xff]  ;;  %v158_v9 = vld [vmem:[#allocation2 + $0x88] sm:$0xff]  ;;  %v701_v59 = vmov 0.0|0.0   ;;  %vm702_vm1 = vmmov 0   ;;  %vm360_vm2 = vcmask 523264  }
  0x15   :  { %v157_v6 = vld [vmem:[#allocation2 + $0x80] sm:$0xff]  ;;  %v572_v7 = vpack.c.bf16 %v50_v5, %v48_v3  ;;  %v142_v11 = vld [vmem:[#allocation2 + $0x8] sm:$0xff]  ;;  %v159_v14 = vld [vmem:[#allocation2 + $0x90] sm:$0xff]  ;;  %s703_s14 = smov [#allocation5]  }
  0x16   :  { %v47_v8 = vld [vmem:[%s892_s0] sm:$0xff]  ;;  %571 = vmatprep.subr.bf16.mxu0 %v570_v4  ;;  %v574_v12 = vpack.c.bf16 %v158_v9, %v157_v6  ;;  %v160_v15 = vld [vmem:[#allocation2 + $0x98] sm:$0xff]  ;;  %v143_v16 = vld [vmem:[#allocation2 + $0x10] sm:$0xff] }
  0x17   :  { %v141_v10 = vld [vmem:[#allocation2] sm:$0xff]  ;;  %573 = vmatpush1.bf16.msra.mxu0 %v572_v7  ;;  %v578_v17 = vpack.c.bf16 %v160_v15, %v159_v14  ;;  %v144_v18 = vld [vmem:[#allocation2 + $0x18] sm:$0xff]  ;;  %v162_v20 = vld [vmem:[#allocation2 + $0xa8] sm:$0xff] }
  0x18   :  { %v576_v13 = vpack.c.bf16 %v142_v11, %v141_v10  ;;  %v161_v19 = vld [vmem:[#allocation2 + $0xa0] sm:$0xff]  ;;  %575 = vmatprep.subr.bf16.mxu1 %v574_v12  ;;  %v580_v21 = vpack.c.bf16 %v144_v18, %v143_v16  ;;  %v146_v24 = vld [vmem:[#allocation2 + $0x28] sm:$0xff]  ;;  %v163_v25 = vld [vmem:[#allocation2 + $0xb0] sm:$0xff]  ;;  %606 = vmatprep.subr.bf16.mxu0 %v701_v59  ;;  %v54_v12 = vlaneseq }
  0x19   :  { %v582_v22 = vpack.c.bf16 %v162_v20, %v161_v19  ;;  %v145_v23 = vld [vmem:[#allocation2 + $0x20] sm:$0xff]  ;;  %v164_v26 = vld [vmem:[#allocation2 + $0xb8] sm:$0xff]  ;;  %v147_v29 = vld [vmem:[#allocation2 + $0x30] sm:$0xff] }
  0x1a   :  { %577 = vmatpush3.bf16.msra.mxu1 %v576_v13  ;;  %450 = vmatmul.mubr.msk.f32.vlgmr.msra.gmra.mrb[0].mxu0 %vm64_vm0, %v47_v8  ;;  %v584_v27 = vpack.c.bf16 %v146_v24, %v145_v23  ;;  %v586_v28 = vpack.c.bf16 %v164_v26, %v163_v25  ;;  %v148_v30 = vld [vmem:[#allocation2 + $0x38] sm:$0xff]  ;;  %v165_v31 = vld [vmem:[#allocation2 + $0xc0] sm:$0xff]  ;;  %v166_v32 = vld [vmem:[#allocation2 + $0xc8] sm:$0xff]  ;;  %v55_v13 = vshrl.u32 %v54_v12, 7 }
  0x1b   :  { %579 = vmatprep.subr.bf16.mxu1 %v578_v17  ;;  %v588_v33 = vpack.c.bf16 %v148_v30, %v147_v29  ;;  %v590_v34 = vpack.c.bf16 %v166_v32, %v165_v31  ;;  %v149_v35 = vld [vmem:[#allocation2 + $0x40] sm:$0xff]  ;;  %v150_v36 = vld [vmem:[#allocation2 + $0x48] sm:$0xff]  ;;  %v167_v37 = vld [vmem:[#allocation2 + $0xd0] sm:$0xff]  ;;  %548 = vmatprep.mubr.msk.f32.mxu0 %vm702_vm1, %v700_v0 }
  0x1c   :  { %v168_v38 = vld [vmem:[#allocation2 + $0xd8] sm:$0xff]  ;;  %v592_v39 = vpack.c.bf16 %v150_v36, %v149_v35  ;;  %v151_v41 = vld [vmem:[#allocation2 + $0x50] sm:$0xff]  ;;  %v169_v43 = vld [vmem:[#allocation2 + $0xe0] sm:$0xff]  ;;  %v56_v14 = vsub.s32 0, %v55_v13  ;;  %v60_v16 = vsub.s32 1, %v55_v13 }
  0x1d   :  { %v594_v40 = vpack.c.bf16 %v168_v38, %v167_v37  ;;  %v152_v42 = vld [vmem:[#allocation2 + $0x58] sm:$0xff]  ;;  %v170_v44 = vld [vmem:[#allocation2 + $0xe8] sm:$0xff]  ;;  %v153_v47 = vld [vmem:[#allocation2 + $0x60] sm:$0xff] }
  0x1e   :  { %581 = vmatpush3.bf16.msra.mxu1 %v580_v21  ;;  %v596_v45 = vpack.c.bf16 %v152_v42, %v151_v41  ;;  %v598_v46 = vpack.c.bf16 %v170_v44, %v169_v43  ;;  %v154_v48 = vld [vmem:[#allocation2 + $0x68] sm:$0xff]  ;;  %v171_v50 = vld [vmem:[#allocation2 + $0xf0] sm:$0xff]  ;;  %v172_v51 = vld [vmem:[#allocation2 + $0xf8] sm:$0xff] }
  0x1f   :  { %583 = vmatprep.subr.bf16.mxu1 %v582_v22  ;;  %v600_v49 = vpack.c.bf16 %v154_v48, %v153_v47  ;;  %v602_v52 = vpack.c.bf16 %v172_v51, %v171_v50  ;;  %v155_v53 = vld [vmem:[#allocation2 + $0x70] sm:$0xff]  ;;  %v156_v54 = vld [vmem:[#allocation2 + $0x78] sm:$0xff]  ;;  %v251_v56 = vld [vmem:[%s897_s5] sm:$0xff] }
  0x20   :  { %v604_v55 = vpack.c.bf16 %v156_v54, %v155_v53  ;;  %v252_v57 = vld [vmem:[%s897_s5 + $0x8] sm:$0xff]  ;;  %v253_v58 = vld [vmem:[%s897_s5 + $0x10] sm:$0xff]  ;;  %v254_v61 = vld [vmem:[%s897_s5 + $0x18] sm:$0xff] }
  0x21   :  { %v607_v60 = vpack.c.bf16 %v252_v57, %v251_v56  ;;  %v610_v62 = vpack.c.bf16 %v254_v61, %v253_v58  ;;  %v255_v63 = vld [vmem:[%s897_s5 + $0x20] sm:$0xff]  ;;  %v256_v1 = vld [vmem:[%s897_s5 + $0x28] sm:$0xff]  ;;  %v257_v3 = vld [vmem:[%s897_s5 + $0x30] sm:$0xff] }
  0x22   :  { %585 = vmatpush3.bf16.msra.mxu1 %v584_v27  ;;  %v613_v2 = vpack.c.bf16 %v256_v1, %v255_v63  ;;  %v258_v4 = vld [vmem:[%s897_s5 + $0x38] sm:$0xff]  ;;  %v259_v6 = vld [vmem:[%s897_s5 + $0x40] sm:$0xff]  ;;  %v260_v7 = vld [vmem:[%s897_s5 + $0x48] sm:$0xff] }
  0x23   :  { %587 = vmatprep.subr.bf16.mxu1 %v586_v28  ;;  %608 = vmatpush3.bf16.msra.mxu0 %v607_v60  ;;  %v616_v5 = vpack.c.bf16 %v258_v4, %v257_v3  ;;  %v619_v8 = vpack.c.bf16 %v260_v7, %v259_v6  ;;  %v261_v9 = vld [vmem:[%s897_s5 + $0x50] sm:$0xff]  ;;  %v262_v10 = vld [vmem:[%s897_s5 + $0x58] sm:$0xff]  ;;  %v52_v15 = vld [vmem:[%s894_s2] sm:$0x3]  ;;  %s441_s2 = sshll.u32 %s703_s14, 4  ;;  %s442_s2 = int_to_ptr.vmem [resolvable:$true] %s441_s2 }
  0x24   :  { %609 = vmatprep.subr.bf16.mxu0 %v701_v59  ;;  %v622_v11 = vpack.c.bf16 %v262_v10, %v261_v9  ;;  %v57_v17 = vrot.slane %v52_v15, %v56_v14  ;;  %v61_v18 = vrot.slane %v52_v15, %v60_v16  ;;  %v263_v25 = vld [vmem:[%s897_s5 + $0x60] sm:$0xff]  ;;  %v264_v26 = vld [vmem:[%s897_s5 + $0x68] sm:$0xff]  ;;  %v265_v28 = vld [vmem:[%s897_s5 + $0x70] sm:$0xff]  ;;  %p676_p9 = scmp.lt.s32.totalorder %s442_s2, %s442_s2 }
  0x25   :  { %v625_v27 = vpack.c.bf16 %v264_v26, %v263_v25  ;;  %v266_v29 = vld [vmem:[%s897_s5 + $0x78] sm:$0xff]  ;;  %v345_v31 = vld [vmem:[%s899_s7] sm:$0xff]  ;;  %v346_v32 = vld [vmem:[%s899_s7 + $0x8] sm:$0xff] }
  0x26   :  { %589 = vmatpush3.bf16.msra.mxu1 %v588_v33  ;;  %v628_v30 = vpack.c.bf16 %v266_v29, %v265_v28  ;;  %v347_v33 = vld [vmem:[%s899_s7 + $0x10] sm:$0xff]  ;;  %v348_v35 = vld [vmem:[%s899_s7 + $0x18] sm:$0xff]  ;;  %v350_v37 = vld [vmem:[%s899_s7 + $0x28] sm:$0xff] }
  0x27   :  { %591 = vmatprep.subr.bf16.mxu1 %v590_v34  ;;  %611 = vmatpush3.bf16.msra.mxu0 %v610_v62  ;;  %v631_v34 = vpack.c.bf16 %v346_v32, %v345_v31  ;;  %v634_v36 = vpack.c.bf16 %v348_v35, %v347_v33  ;;  %v452_v48 = vld [vmem:[%s898_s6] ss:$0 sm:$0xff] }
  0x28   :  { %612 = vmatprep.subr.bf16.mxu0 %v701_v59  ;;  %v453_v53 = vld [vmem:[%s900_s8] ss:$0 sm:$0xff] }
  0x2a   :  { %593 = vmatpush3.bf16.msra.mxu1 %v592_v39 }
  0x2b   :  { %595 = vmatprep.subr.bf16.mxu1 %v594_v40  ;;  %614 = vmatpush3.bf16.msra.mxu0 %v613_v2  ;;  %v451_v40 = vld [vmem:[%s896_s4] ss:$0 sm:$0xff] }
  0x2c   :  { %615 = vmatprep.subr.bf16.mxu0 %v701_v59 }
  0x2e   :  { %597 = vmatpush3.bf16.msra.mxu1 %v596_v45  ;;  %v351_v45 = vld [vmem:[%s899_s7 + $0x30] sm:$0xff] }
  0x2f   :  { %599 = vmatprep.subr.bf16.mxu1 %v598_v46  ;;  %617 = vmatpush3.bf16.msra.mxu0 %v616_v5  ;;  %v352_v46 = vld [vmem:[%s899_s7 + $0x38] sm:$0xff] }
  0x30   :  { %618 = vmatprep.subr.bf16.mxu0 %v701_v59  ;;  %v640_v47 = vpack.c.bf16 %v352_v46, %v351_v45 }
  0x32   :  { %601 = vmatpush3.bf16.msra.mxu1 %v600_v49 }
  0x33   :  { %603 = vmatprep.subr.bf16.mxu1 %v602_v52  ;;  %620 = vmatpush3.bf16.msra.mxu0 %v619_v8 }
  0x34   :  { %621 = vmatprep.subr.bf16.mxu0 %v701_v59 }
  0x36   :  { %605 = vmatpush3.bf16.msra.mxu1 %v604_v55 }
  0x37   :  { %630 = vmatprep.subr.bf16.mxu1 %v701_v59  ;;  %623 = vmatpush3.bf16.msra.mxu0 %v622_v11 }
  0x38   :  { %624 = vmatprep.subr.bf16.mxu0 %v701_v59 }
  0x3b   :  { %626 = vmatpush3.bf16.msra.mxu0 %v625_v27 }
  0x3c   :  { %627 = vmatprep.subr.bf16.mxu0 %v701_v59 }
  0x3f   :  { %629 = vmatpush3.bf16.msra.mxu0 %v628_v30 }
  0xed   :  { %v134_v19 = vpop.f32.mrb[0].mxu0 }
  0xee   :  { %v135_v20 = vadd.f32 %v134_v19, %v57_v17  ;;  %v136_v21 = vpop.f32.mrb[1].mxu0 }
  0xef   :  { %v137_v22 = vadd.f32 %v136_v21, %v61_v18 }
  0xf0   :  { %v139_v24 = vmax.f32 %v135_v20, 0.0 }
  0xf1   :  { %v140_v23 = vmax.f32 %v137_v22, 0.0 }
  0xf3   :  { %244 = vmatprep.mubr.f32.mxu1 %v140_v23 }
  0xf4   :  { %245 = vmatmul.mubr.f32.vlgmr.msra.gmra.mrb[0].mxu1 %v139_v24 }
  0xf5   :  { %567 = vmatprep.mubr.msk.f32.mxu1 %vm702_vm1, %v700_v0  ;;  %632 = vmatpush3.bf16.msra.mxu1 %v631_v34  ;;  %v349_v0 = vld [vmem:[%s899_s7 + $0x20] sm:$0xff]  ;;  %s671_s7 = scalar_lea.vmem %s442_s2, 128 }
  0xf6   :  { %633 = vmatprep.subr.bf16.mxu1 %v701_v59  ;;  %v637_v38 = vpack.c.bf16 %v350_v37, %v349_v0  ;;  %p672_p8 = scmp.ne.s32.totalorder %s442_s2, %s671_s7  ;;  %p677_p10 = scmp.lt.s32.totalorder %s671_s7, %s671_s7 }
  0xf8   :  { %p678_p11 = por %p677_p10, %p676_p9 }
  0xf9   :  { %635 = vmatpush3.bf16.msra.mxu1 %v634_v36 }
  0xfa   :  { %636 = vmatprep.subr.bf16.mxu1 %v701_v59  ;;  %p679_p12 = pnand %p678_p11, %p672_p8 }
  0xfd   :  { %638 = vmatpush3.bf16.msra.mxu1 %v637_v38 }
  0xfe   :  { %639 = vmatprep.subr.bf16.mxu1 %v701_v59 }
 0x101   :  { %641 = vmatpush3.bf16.msra.mxu1 %v640_v47 }
 0x1c7   :  { %v487_v39 = vpop.f32.mrb[0].mxu1 }
 0x1c8   :  { %v488_v41 = vpop.f32.mrb[1].mxu1 }
 0x1c9   :  { %v489_v42 = vadd.f32 %v488_v41, %v487_v39 }
 0x1cb   :  { %v247_v43 = vadd.f32 %v489_v42, %v451_v40 }
 0x1cd   :  { %v250_v44 = vmax.f32 %v247_v43, 0.0 }
 0x1cf   :  { %549 = vmatmul.mubr.f32.vlgmr.msra.gmra.mrb[2].mxu0 %v250_v44 }
 0x2a2   :  { %v340_v49 = vpop.f32.mrb[2].mxu0 }
 0x2a3   :  { %v341_v50 = vadd.f32 %v452_v48, %v340_v49  ;;  %v550_v51 = vpop.f32.mrb[3].mxu0 }
 0x2a5   :  { %v344_v52 = vmax.f32 %v341_v50, 0.0 }
 0x2a7   :  { %568 = vmatmul.mubr.msk.f32.vlgmr.msra.gmra.mrb[2].mxu1 %vm360_vm2, %v344_v52 }
 0x37a   :  { %v430_v54 = vpop.f32.mrb[2].mxu1 }
 0x37b   :  { %v431_v55 = vadd.f32 %v453_v53, %v430_v54  ;;  %v569_v56 = vpop.f32.mrb[3].mxu1 }
 0x37d   :  { %434 = vst [vmem:[#allocation5] sm:$0xff] %v431_v55 }
 0x37e   :  { %682 = shalt.err (!%p679_p12)
}
 0x37f   :  { %s683_s16 = scalar_lea.hbm %s901_s9, 128 }
 0x380   :  { %p684_p13 = scmp.ne.s32.totalorder %s901_s9, %s683_s16  ;;  %p687_p0 = scmp.lt.u32.totalorder %s683_s16, %s901_s9 }
 0x382   :  { %p689_p1 = pnand %p687_p0, %p684_p13 }
 0x384   :  { %692 = shalt.err (!%p689_p1)
}
 0x385   :  { %444 = dma.vmem_to_hbm [thread:$0]  %s442_s2, 128, %s901_s9, [#allocation4]  }
 0x386   :  { %695 = dma.done.wait [#allocation4], 128  }
 0x387   :  { %696 = vsyncadd [#allocation4], 4294967168 }
 0x388   :  { %448 = vsyncpa [#allocation3], 1 }
 0x389   :  { %449 = vsyncpa [#allocation4], 1 }

</bundles_post_ra>
